<compile_context>
chip_gen: v7x
topology: tpu7x:2x2x1
jax: 0.10.0
libtpu: 0.0.40
codegen_flags: <defaults>
</compile_context>

<pallas_src>
import functools

import jax
import jax.numpy as jnp
from jax.experimental import pallas as pl
from jax.experimental.pallas import tpu as pltpu


def _contrastive_kernel(pos_ref, neg_ref, out_ref, *, margin, total_b):
    i = pl.program_id(0)
    tb, n, d = neg_ref.shape

    @pl.when(i == 0)
    def _init():
        out_ref[0, 0] = 0.0

    pos = pos_ref[...]                      # (TB, D), native dtype (fed to MXU as-is)
    neg = neg_ref[...]                      # (TB, N, D)
    pos_f = pos.astype(jnp.float32)         # no-op for f32 inputs; fused into the
    neg_f = neg.astype(jnp.float32)         # square pass for low-precision inputs

    # ||pos||^2 and ||neg||^2  (VPU square + XLU lane reduce)
    pos_sq = jnp.sum(pos_f * pos_f, axis=1, keepdims=True)        # (TB, 1)
    neg_sq = jnp.sum(neg_f * neg_f, axis=2)                       # (TB, N)

    # Cross term <neg[b, n, :], pos[b, :]> on the MXU:
    # one 2-D matmul (TB*N, D) @ (TB, D)^T, then select the per-batch diagonal.
    neg2d = neg.reshape(tb * n, d)
    m = jax.lax.dot_general(
        neg2d, pos,
        dimension_numbers=(((1,), (1,)), ((), ())),
        preferred_element_type=jnp.float32,
    )                                                             # (TB*N, TB)
    m3 = m.reshape(tb, n, tb)
    row_b = jax.lax.broadcasted_iota(jnp.int32, (tb, n, tb), 0)
    col_b = jax.lax.broadcasted_iota(jnp.int32, (tb, n, tb), 2)
    cross = jnp.sum(jnp.where(row_b == col_b, m3, 0.0), axis=2)   # (TB, N)

    # Clamp >= 0: the norm expansion can go slightly negative from cancellation.
    dist_sq = jnp.maximum(neg_sq + pos_sq - 2.0 * cross, 0.0)     # (TB, N)
    neg_dist = jnp.sqrt(dist_sq)
    hinge = jnp.maximum(margin - neg_dist, 0.0)
    per_b_max = jnp.max(hinge * hinge, axis=1, keepdims=True)     # (TB, 1)

    # Mask batch rows past the true batch size (ragged last tile).
    b_idx = i * tb + jax.lax.broadcasted_iota(jnp.int32, (tb, 1), 0)
    valid = b_idx < total_b
    partial = jnp.sum(jnp.where(valid, pos_sq + per_b_max, 0.0))

    out_ref[0, 0] = out_ref[0, 0] + partial

    @pl.when(i == pl.num_programs(0) - 1)
    def _finalize():
        out_ref[0, 0] = out_ref[0, 0] * (1.0 / total_b)


def _pick_batch_tile(b, n, d, itemsize, budget_bytes=6 * 1024 * 1024):
    """Largest batch tile whose negatives block stays under ~6 MiB (safe with
    double-buffering inside the default scoped VMEM of v5e/v6e/v7x); TB is a
    multiple of 8 so the (TB, D) positives block is a legal sublane tile."""
    per_row = max(1, n * d * itemsize)
    max_rows = max(1, budget_bytes // per_row)
    if max_rows >= b:
        return b                      # whole batch in one block (full dim is legal)
    return max(8, (max_rows // 8) * 8)


def multi_negative_contrastive_loss(positive_output, negative_outputs,
                                    margin=1.0, block_b=None):
    """positive_output: (B, D); negative_outputs: (B, N, D) -> scalar f32 loss."""
    b, d = positive_output.shape
    bn, n, dn = negative_outputs.shape
    assert b == bn and d == dn, (positive_output.shape, negative_outputs.shape)

    itemsize = jnp.dtype(negative_outputs.dtype).itemsize
    tb = block_b if block_b is not None else _pick_batch_tile(b, n, d, itemsize)
    grid = (pl.cdiv(b, tb),)

    kernel = functools.partial(_contrastive_kernel, margin=margin, total_b=b)

    bytes_accessed = (b * d + b * n * d) * itemsize + 4
    flops = 2 * b * n * d * (tb + 1)       # MXU cross term (diag trick) + squares

    out = pl.pallas_call(
        kernel,
        out_shape=jax.ShapeDtypeStruct((1, 1), jnp.float32),
        grid=grid,
        in_specs=[
            pl.BlockSpec((tb, d), lambda i: (i, 0)),
            pl.BlockSpec((tb, n, d), lambda i: (i, 0, 0)),
        ],
        # Scalar accumulator lives in SMEM, resident across the whole grid.
        out_specs=pl.BlockSpec(memory_space=pltpu.MemorySpace.SMEM),
        compiler_params=pltpu.CompilerParams(
            dimension_semantics=("arbitrary",),
            vmem_limit_bytes=32 * 1024 * 1024,
        ),
        cost_estimate=pl.CostEstimate(
            flops=flops, transcendentals=b * n, bytes_accessed=bytes_accessed),
    )(positive_output, negative_outputs)
    return out[0, 0]


def _reference_loss(pos, neg, margin=1.0):
    pos = pos.astype(jnp.float32)
    neg = neg.astype(jnp.float32)
    pos_dist = jnp.linalg.norm(pos, axis=1)
    neg_dist = jnp.linalg.norm(neg - pos[:, None, :], axis=2)
    positive_loss = jnp.mean(pos_dist ** 2)
    negative_loss = jnp.mean(jnp.max(jnp.maximum(margin - neg_dist, 0.0) ** 2, axis=1))
    return positive_loss + negative_loss


if __name__ == "__main__":
    key = jax.random.PRNGKey(0)
    k1, k2 = jax.random.split(key)

    # Small shapes; scale so negative distances straddle the margin (= 1.0).
    B, N, D = 20, 8, 128
    scale = 0.06
    positive_output = jax.random.normal(k1, (B, D), dtype=jnp.float32) * scale
    negative_outputs = jax.random.normal(k2, (B, N, D), dtype=jnp.float32) * scale

    ref = _reference_loss(positive_output, negative_outputs)

    # Default tiling (whole batch in one block here).
    loss = multi_negative_contrastive_loss(positive_output, negative_outputs)
    jax.block_until_ready(loss)
    assert jnp.allclose(loss, ref, rtol=1e-4, atol=1e-5), (loss, ref)

    # Forced multi-step grid (batch tile of 8, ragged last tile) to exercise the
    # init / accumulate / finalize / masking path.
    loss_tiled = multi_negative_contrastive_loss(
        positive_output, negative_outputs, block_b=8)
    jax.block_until_ready(loss_tiled)
    assert jnp.allclose(loss_tiled, ref, rtol=1e-4, atol=1e-5), (loss_tiled, ref)

    print("KERNEL_OK")
</pallas_src>

<mosaic_0001>
module attributes {stable_mosaic.version = 11 : i64} {
  func.func @_contrastive_kernel(%arg0: i32, %arg1: memref<20x128xf32, #tpu.memory_space<vmem>>, %arg2: memref<20x8x128xf32, #tpu.memory_space<vmem>>, %arg3: memref<1x1xf32, #tpu.memory_space<smem>>) attributes {dimension_semantics = [#tpu.dimension_semantics<arbitrary>], iteration_bounds = array<i64: 1>, scalar_prefetch = 0 : i64, scratch_operands = 0 : i64, tpu.core_type = #tpu.core_type<tc>, window_params = [{transform_indices = @transform_0, window_bounds = array<i64: 20, 128>}, {transform_indices = @transform_1, window_bounds = array<i64: 20, 8, 128>}, {transform_indices = @transform_2, window_bounds = array<i64: 1, 1>}]} {
    %c0_i32 = arith.constant 0 : i32
    %0 = arith.cmpi eq, %arg0, %c0_i32 : i32
    %1 = arith.extui %0 : i1 to i32
    %c0_i32_0 = arith.constant 0 : i32
    %2 = arith.cmpi ne, %1, %c0_i32_0 : i32
    scf.if %2 {
      %cst_23 = arith.constant 0.000000e+00 : f32
      %c0_24 = arith.constant 0 : index
      %c0_25 = arith.constant 0 : index
      %53 = memref.load %arg3[%c0_24, %c0_25] : memref<1x1xf32, #tpu.memory_space<smem>>
      memref.store %cst_23, %arg3[%c0_24, %c0_25] : memref<1x1xf32, #tpu.memory_space<smem>>
    } else {
    }
    %c0 = arith.constant 0 : index
    %c0_1 = arith.constant 0 : index
    %3 = vector.load %arg1[%c0, %c0_1] : memref<20x128xf32, #tpu.memory_space<vmem>>, vector<20x128xf32>
    %c0_2 = arith.constant 0 : index
    %c0_3 = arith.constant 0 : index
    %c0_4 = arith.constant 0 : index
    %4 = vector.load %arg2[%c0_2, %c0_3, %c0_4] : memref<20x8x128xf32, #tpu.memory_space<vmem>>, vector<20x8x128xf32>
    %5 = arith.mulf %3, %3 : vector<20x128xf32>
    %cst = arith.constant dense<0.000000e+00> : vector<20xf32>
    %6 = vector.multi_reduction <add>, %5, %cst [1] : vector<20x128xf32> to vector<20xf32>
    %7 = vector.shape_cast %6 : vector<20xf32> to vector<20x1xf32>
    %8 = arith.mulf %4, %4 : vector<20x8x128xf32>
    %cst_5 = arith.constant dense<0.000000e+00> : vector<20x8xf32>
    %9 = vector.multi_reduction <add>, %8, %cst_5 [2] : vector<20x8x128xf32> to vector<20x8xf32>
    %10 = vector.shape_cast %4 : vector<20x8x128xf32> to vector<160x128xf32>
    %cst_6 = arith.constant dense<0.000000e+00> : vector<160x20xf32>
    %11 = tpu.matmul %10, %3, %cst_6 {dimension_numbers = #tpu.dot_dimension_numbers<[1], [1], [0], [0], [0, 0, 1, 0], [], []>} : vector<160x128xf32>, vector<20x128xf32>, vector<160x20xf32> -> vector<160x20xf32>
    %12 = vector.shape_cast %11 : vector<160x20xf32> to vector<20x8x20xf32>
    %13 = tpu.iota {dimensions = array<i32: 0>} : vector<20x8x20xi32>
    %14 = tpu.iota {dimensions = array<i32: 2>} : vector<20x8x20xi32>
    %15 = arith.cmpi eq, %13, %14 : vector<20x8x20xi32>
    %cst_7 = arith.constant 0.000000e+00 : f32
    %16 = vector.broadcast %cst_7 : f32 to vector<20x8x20xf32>
    %17 = arith.select %15, %12, %16 : vector<20x8x20xi1>, vector<20x8x20xf32>
    %cst_8 = arith.constant dense<0.000000e+00> : vector<20x8xf32>
    %18 = vector.multi_reduction <add>, %17, %cst_8 [2] : vector<20x8x20xf32> to vector<20x8xf32>
    %19 = vector.broadcast %7 : vector<20x1xf32> to vector<20x8xf32>
    %20 = arith.addf %9, %19 : vector<20x8xf32>
    %cst_9 = arith.constant 2.000000e+00 : f32
    %21 = vector.broadcast %cst_9 : f32 to vector<20x8xf32>
    %22 = arith.mulf %21, %18 : vector<20x8xf32>
    %23 = arith.subf %20, %22 : vector<20x8xf32>
    %cst_10 = arith.constant 0.000000e+00 : f32
    %24 = vector.broadcast %cst_10 : f32 to vector<20x8xf32>
    %25 = arith.maximumf %23, %24 : vector<20x8xf32>
    %26 = math.sqrt %25 : vector<20x8xf32>
    %cst_11 = arith.constant 1.000000e+00 : f32
    %27 = vector.broadcast %cst_11 : f32 to vector<20x8xf32>
    %28 = arith.subf %27, %26 : vector<20x8xf32>
    %cst_12 = arith.constant 0.000000e+00 : f32
    %29 = vector.broadcast %cst_12 : f32 to vector<20x8xf32>
    %30 = arith.maximumf %28, %29 : vector<20x8xf32>
    %31 = arith.mulf %30, %30 : vector<20x8xf32>
    %cst_13 = arith.constant dense<0xFF800000> : vector<20xf32>
    %32 = vector.multi_reduction <maximumf>, %31, %cst_13 [1] : vector<20x8xf32> to vector<20xf32>
    %33 = vector.shape_cast %32 : vector<20xf32> to vector<20x1xf32>
    %c20_i32 = arith.constant 20 : i32
    %34 = arith.muli %arg0, %c20_i32 : i32
    %35 = tpu.iota {dimensions = array<i32: 0>} : vector<20x1xi32>
    %36 = vector.broadcast %34 : i32 to vector<20x1xi32>
    %37 = arith.addi %36, %35 : vector<20x1xi32>
    %c20_i32_14 = arith.constant 20 : i32
    %38 = vector.broadcast %c20_i32_14 : i32 to vector<20x1xi32>
    %39 = arith.cmpi slt, %37, %38 : vector<20x1xi32>
    %40 = arith.addf %7, %33 : vector<20x1xf32>
    %cst_15 = arith.constant 0.000000e+00 : f32
    %41 = vector.broadcast %cst_15 : f32 to vector<20x1xf32>
    %42 = arith.select %39, %40, %41 : vector<20x1xi1>, vector<20x1xf32>
    %43 = vector.shape_cast %42 : vector<20x1xf32> to vector<1x20x1xf32>
    %cst_16 = arith.constant dense<0.000000e+00> : vector<1xf32>
    %44 = vector.multi_reduction <add>, %43, %cst_16 [1, 2] : vector<1x20x1xf32> to vector<1xf32>
    %45 = vector.shape_cast %44 : vector<1xf32> to vector<1x1x1xf32>
    %46 = vector.extract %45[0, 0, 0] : f32 from vector<1x1x1xf32>
    %c0_17 = arith.constant 0 : index
    %c0_18 = arith.constant 0 : index
    %47 = memref.load %arg3[%c0_17, %c0_18] : memref<1x1xf32, #tpu.memory_space<smem>>
    %48 = arith.addf %47, %46 : f32
    %c0_19 = arith.constant 0 : index
    %c0_20 = arith.constant 0 : index
    %49 = memref.load %arg3[%c0_19, %c0_20] : memref<1x1xf32, #tpu.memory_space<smem>>
    memref.store %48, %arg3[%c0_19, %c0_20] : memref<1x1xf32, #tpu.memory_space<smem>>
    %c0_i32_21 = arith.constant 0 : i32
    %50 = arith.cmpi eq, %arg0, %c0_i32_21 : i32
    %51 = arith.extui %50 : i1 to i32
    %c0_i32_22 = arith.constant 0 : i32
    %52 = arith.cmpi ne, %51, %c0_i32_22 : i32
    scf.if %52 {
      %c0_23 = arith.constant 0 : index
      %c0_24 = arith.constant 0 : index
      %53 = memref.load %arg3[%c0_23, %c0_24] : memref<1x1xf32, #tpu.memory_space<smem>>
      %cst_25 = arith.constant 5.000000e-02 : f32
      %54 = arith.mulf %53, %cst_25 : f32
      %c0_26 = arith.constant 0 : index
      %c0_27 = arith.constant 0 : index
      %55 = memref.load %arg3[%c0_26, %c0_27] : memref<1x1xf32, #tpu.memory_space<smem>>
      memref.store %54, %arg3[%c0_26, %c0_27] : memref<1x1xf32, #tpu.memory_space<smem>>
    } else {
    }
    return
  }
  func.func @transform_0(%arg0: i32) -> (i32, i32) {
    %c0_i32 = arith.constant 0 : i32
    %c0_i32_0 = arith.constant 0 : i32
    return %arg0, %c0_i32 : i32, i32
  }
  func.func @transform_1(%arg0: i32) -> (i32, i32, i32) {
    %c0_i32 = arith.constant 0 : i32
    %c0_i32_0 = arith.constant 0 : i32
    %c0_i32_1 = arith.constant 0 : i32
    return %arg0, %c0_i32, %c0_i32_0 : i32, i32, i32
  }
  func.func @transform_2(%arg0: i32) -> (i32, i32) {
    %c0_i32 = arith.constant 0 : i32
    %c0_i32_0 = arith.constant 0 : i32
    %c0_i32_1 = arith.constant 0 : i32
    return %c0_i32, %c0_i32_0 : i32, i32
  }
}

</mosaic_0001>

<bundles_post_ra>
// kernel: tpu_custom_call.1
= control target key start
LH: loop header
LB: loop body
LE: loop exit
PB: predicated region body
PF: predicated region fallthrough
CT: control target
= control target key end

     0   :  { %7 = vsyncpa [#allocation3], 0  ;;  %s1705_s0 = inlined_call_operand.hbm [shape: f32[20,128], index: 0, kind: input, shape index: {}]   ;;  %s1706_s1 = inlined_call_operand.hbm [shape: f32[20,8,128], index: 1, kind: input, shape index: {}]   ;;  %s1707_s2 = inlined_call_operand.hbm [shape: f32[1,1], index: 2, kind: output, shape index: {}]  }
   0x1   :  { %8 = vsyncpa [#allocation6], 0 }
   0x2   :  { %9 = vsyncpa [#allocation4], 0  ;;  %s1226_s9 = smov [#allocation2]   ;;  %s1166_s13 = scalar_lea.hbm %s1705_s0, 384 }
   0x3   :  { %s15_s10 = sshll.u32 %s1226_s9, 4  ;;  %p1167_p0 = scmp.ne.s32.totalorder %s1705_s0, %s1166_s13  ;;  %s16_s10 = int_to_ptr.vmem [resolvable:$true] %s15_s10 }
   0x4   :  { %p1170_p1 = scmp.lt.u32.totalorder %s1166_s13, %s1705_s0 }
   0x6   :  { %p1172_p2 = pnand %p1170_p1, %p1167_p0 }
   0x8   :  { %1175 = shalt.err (!%p1172_p2)
}
   0x9   :  { %s1176_s18 = scalar_lea.vmem %s16_s10, 384  ;;  %p1181_p4 = scmp.lt.s32.totalorder %s16_s10, %s16_s10 }
   0xa   :  { %p1177_p3 = scmp.ne.s32.totalorder %s16_s10, %s1176_s18  ;;  %p1182_p5 = scmp.lt.s32.totalorder %s1176_s18, %s1176_s18 }
   0xc   :  { %p1183_p6 = por %p1182_p5, %p1181_p4 }
   0xe   :  { %p1184_p7 = pnand %p1183_p6, %p1177_p3 }
  0x10   :  { %1187 = shalt.err (!%p1184_p7)
}
  0x11   :  { %s1227_s19 = smov 128   ;;  %s1228_s20 = smov 8  }
  0x12   :  { %21 = dma.hbm_to_vmem [thread:$0]  %s1705_s0, 384, %s16_s10, [#allocation3], %s1227_s19, %s1227_s19, %s1228_s20  }
  0x13   :  { %s1229_s23 = smov [#allocation5]   ;;  %s1188_s27 = scalar_lea.hbm %s1706_s1, 2560 }
  0x14   :  { %s27_s24 = sshll.u32 %s1229_s23, 4  ;;  %p1189_p8 = scmp.ne.s32.totalorder %s1706_s1, %s1188_s27  ;;  %s28_s24 = int_to_ptr.vmem [resolvable:$true] %s27_s24 }
  0x15   :  { %p1192_p9 = scmp.lt.u32.totalorder %s1188_s27, %s1706_s1 }
  0x17   :  { %p1194_p10 = pnand %p1192_p9, %p1189_p8 }
  0x19   :  { %1197 = shalt.err (!%p1194_p10)
}
  0x1a   :  { %s1198_s4 = scalar_lea.vmem %s28_s24, 2560  ;;  %p1203_p12 = scmp.lt.s32.totalorder %s28_s24, %s28_s24 }
  0x1b   :  { %p1199_p11 = scmp.ne.s32.totalorder %s28_s24, %s1198_s4  ;;  %p1204_p13 = scmp.lt.s32.totalorder %s1198_s4, %s1198_s4 }
  0x1d   :  { %p1205_p0 = por %p1204_p13, %p1203_p12 }
  0x1f   :  { %p1206_p1 = pnand %p1205_p0, %p1199_p11 }
  0x21   :  { %1209 = shalt.err (!%p1206_p1)
}
  0x22   :  { %33 = dma.hbm_to_vmem [thread:$0]  %s1706_s1, 2560, %s28_s24, [#allocation6], %s1227_s19, %s1227_s19, %s1228_s20  }
  0x23   :  { %1220 = dma.done.wait [#allocation3], 384  }
  0x24   :  { %1221 = vsyncadd [#allocation3], 4294966912 }
  0x25   :  { %1222 = dma.done.wait [#allocation6], 2560  }
  0x26   :  { %1223 = vsyncadd [#allocation6], 4294964736  ;;  %v46_v0 = vld [vmem:[#allocation2] sm:$0xff]  ;;  %v47_v1 = vld [vmem:[#allocation2 + $0x8] sm:$0xff]  ;;  %vm76_vm0 = vcmask 1043456   ;;  %v305_v47 = vlaneseq  ;;  %vm347_vm4 = vcmask 162816  }
  0x27   :  { %v1107_v2 = vpack.c.bf16 %v47_v1, %v46_v0  ;;  %v49_v3 = vld [vmem:[#allocation5] sm:$0xff]  ;;  %v59_v4 = vld [vmem:[#allocation5 + $0x50] sm:$0xff]  ;;  %v48_v5 = vld [vmem:[#allocation2 + $0x10] sm:$0xf]  ;;  %v69_v7 = vmul.f32 %v46_v0, %v46_v0  ;;  %v70_v10 = vmul.f32 %v47_v1, %v47_v1  ;;  %s1210_s9 = scalar_lea.hbm %s1707_s2, 16 }
  0x28   :  { %1077 = vmatprep.mubr.f32.mxu0 %v49_v3  ;;  %1092 = vmatprep.mubr.f32.mxu1 %v59_v4  ;;  %v80_v6 = vmul.f32 %v49_v3, %v49_v3  ;;  %v50_v8 = vld [vmem:[#allocation5 + $0x8] sm:$0xff]  ;;  %v57_v11 = vld [vmem:[#allocation5 + $0x40] sm:$0xff]  ;;  %v60_v15 = vld [vmem:[#allocation5 + $0x58] sm:$0xff]  ;;  %v90_v18 = vmul.f32 %v59_v4, %v59_v4  ;;  %v71_v26 = vmul.f32 %v48_v5, %v48_v5  ;;  %v1275_v48 = vand.u32 127, %v305_v47  ;;  %p1211_p2 = scmp.ne.s32.totalorder %s1707_s2, %s1210_s9  ;;  %p1214_p3 = scmp.lt.u32.totalorder %s1210_s9, %s1707_s2 }
  0x29   :  { %1108 = vmatprep.subr.bf16.mxu0 %v1107_v2  ;;  %1111 = vmatprep.subr.bf16.mxu1 %v1107_v2  ;;  %v81_v9 = vmul.f32 %v50_v8, %v50_v8  ;;  %v58_v12 = vld [vmem:[#allocation5 + $0x48] sm:$0xff]  ;;  %v88_v14 = vmul.f32 %v57_v11, %v57_v11  ;;  %v51_v16 = vld [vmem:[#allocation5 + $0x10] sm:$0xff]  ;;  %v61_v17 = vld [vmem:[#allocation5 + $0x60] sm:$0xff]  ;;  %v91_v24 = vmul.f32 %v60_v15, %v60_v15 }
  0x2a   :  { %1110 = vmatpush3.bf16.xpose.msra.mxu0 %v1107_v2  ;;  %1113 = vmatpush3.bf16.xpose.msra.mxu1 %v1107_v2  ;;  %v89_v13 = vmul.f32 %v58_v12, %v58_v12  ;;  %v82_v19 = vmul.f32 %v51_v16, %v51_v16  ;;  %v52_v20 = vld [vmem:[#allocation5 + $0x18] sm:$0xff]  ;;  %v62_v21 = vld [vmem:[#allocation5 + $0x68] sm:$0xff]  ;;  %v53_v22 = vld [vmem:[#allocation5 + $0x20] sm:$0xff]  ;;  %v77_v32 = vsel %vm76_vm0, %v71_v26, 0.0  ;;  %v92_v37 = vmul.f32 %v61_v17, %v61_v17  ;;  %p1216_p4 = pnand %p1214_p3, %p1211_p2 }
  0x2b   :  { %1075 = vmatprep.subr.mxu0 %v48_v5  ;;  %1112 = vmatprep.subr.mxu1 %v48_v5  ;;  %v63_v23 = vld [vmem:[#allocation5 + $0x70] sm:$0xff]  ;;  %v83_v25 = vmul.f32 %v52_v20, %v52_v20  ;;  %v54_v27 = vld [vmem:[#allocation5 + $0x28] sm:$0xff]  ;;  %v64_v28 = vld [vmem:[#allocation5 + $0x78] sm:$0xff]  ;;  %v84_v31 = vmul.f32 %v53_v22, %v53_v22  ;;  %v93_v40 = vmul.f32 %v62_v21, %v62_v21  ;;  %vm308_vm1 = vcmp.eq.s32.totalorder %v1275_v48, 1 }
  0x2c   :  { %100 = vadd.xlane.f32.xlu1 %v80_v6  ;;  %72 = vadd.xlane.f32.xlu0 %v69_v7  ;;  %v55_v29 = vld [vmem:[#allocation5 + $0x30] sm:$0xff]  ;;  %v65_v30 = vld [vmem:[#allocation5 + $0x80] sm:$0xff]  ;;  %v56_v33 = vld [vmem:[#allocation5 + $0x38] sm:$0xff]  ;;  %v85_v36 = vmul.f32 %v54_v27, %v54_v27  ;;  %v94_v42 = vmul.f32 %v63_v23, %v63_v23  ;;  %v95_v45 = vmul.f32 %v64_v28, %v64_v28  ;;  %vm318_vm2 = vcmp.eq.s32.totalorder %v1275_v48, 11 }
  0x2d   :  { %v66_v34 = vld [vmem:[#allocation5 + $0x88] sm:$0xff]  ;;  %v67_v35 = vld [vmem:[#allocation5 + $0x90] sm:$0xff]  ;;  %v1271_v38 = vld [vmem:[#allocation5 + $0x98] sm:$0xff]  ;;  %v86_v39 = vmul.f32 %v55_v29, %v55_v29  ;;  %v96_v41 = vmul.f32 %v65_v30, %v65_v30  ;;  %v87_v43 = vmul.f32 %v56_v33, %v56_v33  ;;  %vm307_vm3 = vcmp.eq.s32.totalorder %v1275_v48, 0 }
  0x2e   :  { %v97_v44 = vmul.f32 %v66_v34, %v66_v34  ;;  %v98_v46 = vmul.f32 %v67_v35, %v67_v35  ;;  %vm310_vm5 = vcmp.eq.s32.totalorder %v1275_v48, 3  ;;  %vm320_vm6 = vcmp.eq.s32.totalorder %v1275_v48, 13 }
  0x2f   :  { %vm317_vm7 = vcmp.eq.s32.totalorder %v1275_v48, 10  ;;  %vm312_vm8 = vcmp.eq.s32.totalorder %v1275_v48, 5  ;;  %vm309_vm9 = vcmp.eq.s32.totalorder %v1275_v48, 2  ;;  %vm311_vm10 = vcmp.eq.s32.totalorder %v1275_v48, 4 }
  0x30   :  { %102 = vadd.xlane.f32.xlu1 %v81_v9  ;;  %74 = vadd.xlane.f32.xlu0 %v70_v10  ;;  %vm319_vm11 = vcmp.eq.s32.totalorder %v1275_v48, 12  ;;  %vm313_vm12 = vcmp.eq.s32.totalorder %v1275_v48, 6  ;;  %vm321_vm13 = vcmp.eq.s32.totalorder %v1275_v48, 14  ;;  %vm323_vm14 = vcmp.eq.s32.totalorder %v1275_v48, 16 }
  0x31   :  { %vm324_vm15 = vcmp.eq.s32.totalorder %v1275_v48, 17  ;;  %vm316_vm0 = vcmp.eq.s32.totalorder %v1275_v48, 9 }
  0x32   :  { %1076 = vmatpush3.xpose.msra.mxu0 %v48_v5  ;;  %1114 = vmatpush3.xpose.msra.mxu1 %v48_v5 }
  0x34   :  { %118 = vadd.xlane.f32.xlu1 %v89_v13  ;;  %116 = vadd.xlane.f32.xlu0 %v88_v14 }
  0x35   :  { %1078 = vmatmul.mubr.f32.vlgmr.msra.gmra.mrb[0].mxu0 %v50_v8  ;;  %1093 = vmatmul.mubr.f32.vlgmr.msra.gmra.mrb[0].mxu1 %v60_v15 }
  0x36   :  { %1080 = vmatprep.mubr.f32.mxu0 %v51_v16  ;;  %1095 = vmatprep.mubr.f32.mxu1 %v61_v17 }
  0x38   :  { %120 = vadd.xlane.f32.xlu1 %v90_v18  ;;  %104 = vadd.xlane.f32.xlu0 %v82_v19 }
  0x39   :  { %1081 = vmatmul.mubr.f32.gmra.mrb[2].mxu0 %v52_v20  ;;  %1096 = vmatmul.mubr.f32.gmra.mrb[2].mxu1 %v62_v21 }
  0x3a   :  { %1083 = vmatprep.mubr.f32.mxu0 %v53_v22  ;;  %1098 = vmatprep.mubr.f32.mxu1 %v63_v23 }
  0x3c   :  { %122 = vadd.xlane.f32.xlu1 %v91_v24  ;;  %106 = vadd.xlane.f32.xlu0 %v83_v25 }
  0x3d   :  { %1084 = vmatmul.mubr.f32.gmra.mrb[4].mxu0 %v54_v27  ;;  %1099 = vmatmul.mubr.f32.gmra.mrb[4].mxu1 %v64_v28 }
  0x3e   :  { %1086 = vmatprep.mubr.f32.mxu0 %v55_v29  ;;  %1101 = vmatprep.mubr.f32.mxu1 %v65_v30 }
  0x40   :  { %108 = vadd.xlane.f32.xlu1 %v84_v31  ;;  %78 = vadd.xlane.f32.xlu0 %v77_v32 }
  0x41   :  { %1087 = vmatmul.mubr.f32.gmra.mrb[6].mxu0 %v56_v33  ;;  %1102 = vmatmul.mubr.f32.gmra.mrb[6].mxu1 %v66_v34 }
  0x42   :  { %1089 = vmatprep.mubr.f32.mxu0 %v57_v11  ;;  %1104 = vmatprep.mubr.f32.mxu1 %v67_v35 }
  0x44   :  { %110 = vadd.xlane.f32.xlu1 %v85_v36  ;;  %124 = vadd.xlane.f32.xlu0 %v92_v37 }
  0x45   :  { %1090 = vmatmul.mubr.f32.gmra.mrb[8].mxu0 %v58_v12  ;;  %1105 = vmatmul.mubr.f32.gmra.mrb[8].mxu1 %v1271_v38 }
  0x48   :  { %112 = vadd.xlane.f32.xlu1 %v86_v39  ;;  %126 = vadd.xlane.f32.xlu0 %v93_v40 }
  0x4c   :  { %132 = vadd.xlane.f32.xlu1 %v96_v41  ;;  %128 = vadd.xlane.f32.xlu0 %v94_v42 }
  0x50   :  { %114 = vadd.xlane.f32.xlu1 %v87_v43  ;;  %134 = vadd.xlane.f32.xlu0 %v97_v44  ;;  %v99_v43 = vmul.f32 %v1271_v38, %v1271_v38 }
  0x54   :  { %130 = vadd.xlane.f32.xlu0 %v95_v45  ;;  %136 = vadd.xlane.f32.xlu1 %v98_v46 }
 0x108   :  { %v1079_v49 = vpop.f32.mrb[0].mxu0  ;;  %v1094_v50 = vpop.f32.mrb[0].mxu1 }
 0x109   :  { %v328_v51 = vsel %vm308_vm1, %v1079_v49, 0.0  ;;  %v206_v52 = vpop.f32.mrb[1].mxu0  ;;  %v338_v53 = vsel %vm318_vm2, %v1094_v50, 0.0  ;;  %v256_v54 = vpop.f32.mrb[1].mxu1  ;;  %vm314_vm1 = vcmp.eq.s32.totalorder %v1275_v48, 7  ;;  %vm322_vm2 = vcmp.eq.s32.totalorder %v1275_v48, 15 }
 0x10a   :  { %v327_v55 = vsel %vm307_vm3, %v206_v52, 0.0  ;;  %v351_v56 = vsel %vm347_vm4, %v328_v51, 0.0  ;;  %v381_v59 = vsel %vm347_vm4, %v338_v53, 0.0  ;;  %v337_v2 = vsel %vm317_vm7, %v256_v54, 0.0  ;;  %v1319_v50 = vpop.xlane.xlu0 %72  ;;  %v101_v51 = vpop.xlane.xlu1 %100 }
 0x10b   :  { %352 = vadd.xlane.f32.xlu1 %v351_v56  ;;  %v348_v57 = vsel %vm347_vm4, %v327_v55, 0.0  ;;  %v378_v9 = vsel %vm347_vm4, %v337_v2, 0.0  ;;  %vm315_vm3 = vcmp.eq.s32.totalorder %v1275_v48, 8  ;;  %v1230_v49 = vmov 0  }
 0x10c   :  { %349 = vadd.xlane.f32.xlu0 %v348_v57  ;;  %v1082_v58 = vpop.f32.mrb[2].mxu0  ;;  %v1097_v60 = vpop.f32.mrb[2].mxu1  ;;  %1125 = vset.pattern.permute.xlu1 %v1230_v49 }
 0x10d   :  { %v330_v61 = vsel %vm310_vm5, %v1082_v58, 0.0  ;;  %v216_v62 = vpop.f32.mrb[3].mxu0  ;;  %v266_v63 = vpop.f32.mrb[3].mxu1  ;;  %v340_v1 = vsel %vm320_vm6, %v1097_v60, 0.0  ;;  %vm325_vm5 = vcmp.eq.s32.totalorder %v1275_v48, 18  ;;  %vm326_vm6 = vcmp.eq.s32.totalorder %v1275_v48, 19  ;;  %1124 = vset.pattern.permute.xlu0 %v1230_v49 }
 0x10e   :  { %v357_v0 = vsel %vm347_vm4, %v330_v61, 0.0  ;;  %v387_v6 = vsel %vm347_vm4, %v340_v1, 0.0  ;;  %v329_v10 = vsel %vm309_vm9, %v216_v62, 0.0  ;;  %v339_v18 = vsel %vm319_vm11, %v266_v63, 0.0  ;;  %v1321_v52 = vpop.xlane.xlu0 %74  ;;  %v103_v53 = vpop.xlane.xlu1 %102 }
 0x10f   :  { %382 = vadd.xlane.f32.xlu1 %v381_v59  ;;  %v354_v15 = vsel %vm347_vm4, %v329_v10, 0.0  ;;  %v384_v23 = vsel %vm347_vm4, %v339_v18, 0.0 }
 0x110   :  { %358 = vadd.xlane.f32.xlu0 %v357_v0  ;;  %v1085_v3 = vpop.f32.mrb[4].mxu0  ;;  %v1100_v4 = vpop.f32.mrb[4].mxu1 }
 0x111   :  { %v332_v5 = vsel %vm312_vm8, %v1085_v3, 0.0  ;;  %v226_v7 = vpop.f32.mrb[5].mxu0  ;;  %v276_v8 = vpop.f32.mrb[5].mxu1  ;;  %v342_v36 = vsel %vm322_vm2, %v1100_v4, 0.0  ;;  %v1334_v3 = vshrl.u32 %v305_v47, 7 }
 0x112   :  { %v363_v11 = vsel %vm347_vm4, %v332_v5, 0.0  ;;  %v331_v14 = vsel %vm311_vm10, %v226_v7, 0.0  ;;  %v341_v26 = vsel %vm321_vm13, %v276_v8, 0.0  ;;  %v393_v40 = vsel %vm347_vm4, %v342_v36, 0.0  ;;  %v117_v54 = vpop.xlane.xlu0 %116  ;;  %v119_v38 = vpop.xlane.xlu1 %118 }
 0x113   :  { %379 = vadd.xlane.f32.xlu1 %v378_v9  ;;  %v360_v19 = vsel %vm347_vm4, %v331_v14, 0.0  ;;  %v390_v29 = vsel %vm347_vm4, %v341_v26, 0.0  ;;  %v413_v7 = vsub.s32 0, %v1334_v3  ;;  %v1345_v8 = vsub.s32 2, %v1334_v3 }
 0x114   :  { %388 = vadd.xlane.f32.xlu0 %v387_v6  ;;  %v1088_v12 = vpop.f32.mrb[6].mxu0  ;;  %v1103_v13 = vpop.f32.mrb[6].mxu1  ;;  %v1341_v6 = vsub.s32 1, %v1334_v3  ;;  %v1348_v9 = vsub.s32 3, %v1334_v3  ;;  %v429_v10 = vsub.s32 4, %v1334_v3  ;;  %v433_v47 = vsub.s32 5, %v1334_v3 }
 0x115   :  { %v236_v16 = vpop.f32.mrb[7].mxu0  ;;  %v286_v17 = vpop.f32.mrb[7].mxu1  ;;  %v344_v30 = vsel %vm324_vm15, %v1103_v13, 0.0  ;;  %v334_v34 = vsel %vm314_vm1, %v1088_v12, 0.0  ;;  %v441_v14 = vsub.s32 7, %v1334_v3  ;;  %v422_v18 = vrot.slane %v1319_v50, %v1345_v8 }
 0x116   :  { %v333_v22 = vsel %vm313_vm12, %v236_v16, 0.0  ;;  %v343_v28 = vsel %vm323_vm14, %v286_v17, 0.0  ;;  %v399_v33 = vsel %vm347_vm4, %v344_v30, 0.0  ;;  %v369_v37 = vsel %vm347_vm4, %v334_v34, 0.0  ;;  %v105_v55 = vpop.xlane.xlu0 %104  ;;  %v121_v56 = vpop.xlane.xlu1 %120 }
 0x117   :  { %364 = vadd.xlane.f32.xlu1 %v363_v11  ;;  %v366_v27 = vsel %vm347_vm4, %v333_v22, 0.0  ;;  %v396_v31 = vsel %vm347_vm4, %v343_v28, 0.0  ;;  %v437_v11 = vsub.s32 6, %v1334_v3  ;;  %v418_v13 = vrot.slane %v1319_v50, %v1341_v6 }
 0x118   :  { %355 = vadd.xlane.f32.xlu0 %v354_v15  ;;  %v1091_v20 = vpop.f32.mrb[8].mxu0  ;;  %v1106_v21 = vpop.f32.mrb[8].mxu1  ;;  %v414_v16 = vrot.slane %v1319_v50, %v413_v7  ;;  %v450_v17 = vrot.slane %v1321_v52, %v1341_v6  ;;  %v454_v22 = vrot.slane %v1321_v52, %v1345_v8  ;;  %v442_v28 = vrot.slane %v1319_v50, %v441_v14 }
 0x119   :  { %v246_v24 = vpop.f32.mrb[9].mxu0  ;;  %v296_v25 = vpop.f32.mrb[9].mxu1  ;;  %v336_v32 = vsel %vm316_vm0, %v1091_v20, 0.0  ;;  %v346_v45 = vsel %vm326_vm6, %v1106_v21, 0.0  ;;  %v430_v20 = vrot.slane %v1319_v50, %v429_v10  ;;  %v446_v21 = vrot.slane %v1321_v52, %v413_v7 }
 0x11a   :  { %v375_v35 = vsel %vm347_vm4, %v336_v32, 0.0  ;;  %v335_v39 = vsel %vm315_vm3, %v246_v24, 0.0  ;;  %v345_v42 = vsel %vm325_vm5, %v296_v25, 0.0  ;;  %v405_v46 = vsel %vm347_vm4, %v346_v45, 0.0  ;;  %v107_v57 = vpop.xlane.xlu0 %106  ;;  %v123_v58 = vpop.xlane.xlu1 %122 }
 0x11b   :  { %361 = vadd.xlane.f32.xlu1 %v360_v19  ;;  %v372_v41 = vsel %vm347_vm4, %v335_v39, 0.0  ;;  %v402_v44 = vsel %vm347_vm4, %v345_v42, 0.0  ;;  %v426_v19 = vrot.slane %v1319_v50, %v1348_v9  ;;  %v438_v24 = vrot.slane %v1319_v50, %v437_v11 }
 0x11c   :  { %385 = vadd.xlane.f32.xlu0 %v384_v23  ;;  %v434_v23 = vrot.slane %v1319_v50, %v433_v47  ;;  %v512_v26 = vadd.f32 %v418_v13, %v103_v53  ;;  %v466_v32 = vrot.slane %v1321_v52, %v433_v47  ;;  %v470_v36 = vrot.slane %v1321_v52, %v437_v11 }
 0x11d   :  { %v1382_v42 = vadd.f32 %v422_v18, %v105_v55 }
 0x11e   :  { %v1323_v59 = vpop.xlane.xlu0 %78  ;;  %v109_v60 = vpop.xlane.xlu1 %108 }
 0x11f   :  { %367 = vadd.xlane.f32.xlu1 %v366_v27  ;;  %v458_v27 = vrot.slane %v1321_v52, %v1348_v9  ;;  %v486_v55 = vrot.slane %v1323_v59, %v1345_v8 }
 0x120   :  { %391 = vadd.xlane.f32.xlu0 %v390_v29 }
 0x121   :  { %v522_v45 = vadd.f32 %v458_v27, %v123_v58 }
 0x122   :  { %v125_v61 = vpop.xlane.xlu0 %124  ;;  %v111_v62 = vpop.xlane.xlu1 %110 }
 0x123   :  { %397 = vadd.xlane.f32.xlu1 %v396_v31  ;;  %v462_v31 = vrot.slane %v1321_v52, %v429_v10  ;;  %v478_v10 = vrot.slane %v1323_v59, %v413_v7 }
 0x124   :  { %400 = vadd.xlane.f32.xlu0 %v399_v33  ;;  %v511_v33 = vadd.f32 %v414_v16, %v101_v51 }
 0x125   :  { %v1396_v58 = vadd.f32 %v462_v31, %v125_v61 }
 0x126   :  { %v1325_v63 = vpop.xlane.xlu0 %126  ;;  %v1327_v0 = vpop.xlane.xlu1 %112 }
 0x127   :  { %376 = vadd.xlane.f32.xlu1 %v375_v35  ;;  %v1376_v35 = vadd.f32 %v450_v17, %v119_v38  ;;  %v1386_v38 = vadd.f32 %v430_v20, %v109_v60  ;;  %v1400_v7 = vadd.f32 %v438_v24, %v1327_v0 }
 0x128   :  { %370 = vadd.xlane.f32.xlu0 %v369_v37  ;;  %v474_v37 = vrot.slane %v1321_v52, %v441_v14  ;;  %v524_v14 = vadd.f32 %v466_v32, %v1325_v63 }
 0x12a   :  { %v1329_v1 = vpop.xlane.xlu0 %128  ;;  %v1331_v2 = vpop.xlane.xlu1 %132 }
 0x12b   :  { %394 = vadd.xlane.f32.xlu1 %v393_v40  ;;  %v1380_v40 = vadd.f32 %v446_v21, %v117_v54  ;;  %v482_v54 = vrot.slane %v1323_v59, %v1341_v6  ;;  %v1406_v8 = vadd.f32 %v478_v10, %v1331_v2 }
 0x12c   :  { %373 = vadd.xlane.f32.xlu0 %v372_v41  ;;  %v521_v41 = vadd.f32 %v454_v22, %v121_v56  ;;  %v490_v22 = vrot.slane %v1323_v59, %v1348_v9 }
 0x12e   :  { %v1336_v4 = vpop.xlane.xlu0 %134  ;;  %v1338_v5 = vpop.xlane.xlu1 %114 }
 0x12f   :  { %138 = vadd.xlane.f32.xlu1 %v99_v43  ;;  %v1417_v0 = vadd.f32 %v482_v54, %v1336_v4 }
 0x130   :  { %403 = vadd.xlane.f32.xlu0 %v402_v44 }
 0x132   :  { %v1353_v12 = vpop.xlane.xlu1 %136  ;;  %v131_v15 = vpop.xlane.xlu0 %130 }
 0x133   :  { %v1420_v20 = vadd.f32 %v474_v37, %v131_v15  ;;  %v1423_v2 = vadd.f32 %v486_v55, %v1353_v12 }
 0x134   :  { %406 = vadd.xlane.f32.xlu0 %v405_v46  ;;  %v514_v46 = vadd.f32 %v426_v19, %v107_v57  ;;  %v516_v57 = vadd.f32 %v434_v23, %v111_v62  ;;  %v1409_v62 = vadd.f32 %v470_v36, %v1329_v1  ;;  %v1414_v19 = vadd.f32 %v442_v28, %v1338_v5 }
 0x198   :  { %v353_v25 = vpop.xlane.xlu1 %352 }
 0x199   :  { %v532_v29 = vmul.f32 2.0, %v353_v25  ;;  %v350_v30 = vpop.xlane.xlu0 %349 }
 0x19a   :  { %v531_v34 = vmul.f32 2.0, %v350_v30 }
 0x19b   :  { %v552_v39 = vsub.f32 %v512_v26, %v532_v29 }
 0x19c   :  { %v551_v43 = vsub.f32 %v511_v33, %v531_v34  ;;  %v383_v44 = vpop.xlane.xlu1 %382 }
 0x19d   :  { %v1384_v49 = vmax.f32 %v552_v39, 0.0  ;;  %v542_v51 = vmul.f32 2.0, %v383_v44  ;;  %v359_v53 = vpop.xlane.xlu0 %358 }
 0x19e   :  { %v1389_v47 = vmax.f32 %v551_v43, 0.0  ;;  %v534_v11 = vmul.f32 2.0, %v359_v53 }
 0x19f   :  { %1126 = vrsqrt.f32 %v1384_v49  ;;  %v562_v56 = vsub.f32 %v522_v45, %v542_v51  ;;  %vm600_vm4 = vcmp.eq.f32.partialorder %v1384_v49, inf  ;;  %vm602_vm7 = vcmp.eq.f32.partialorder %v1384_v49, 0.0 }
 0x1a0   :  { %1128 = vrsqrt.f32 %v1389_v47  ;;  %v554_v60 = vsub.f32 %v514_v46, %v534_v11  ;;  %v380_v13 = vpop.xlane.xlu1 %379  ;;  %v603_v12 = vand.u32 2147483648, %v1384_v49  ;;  %vm593_vm8 = vcmp.eq.f32.partialorder %v1389_v47, inf }
 0x1a1   :  { %v1403_v16 = vmax.f32 %v562_v56, 0.0  ;;  %v541_v6 = vmul.f32 2.0, %v380_v13  ;;  %v389_v17 = vpop.xlane.xlu0 %388  ;;  %vm595_vm9 = vcmp.eq.f32.partialorder %v1389_v47, 0.0  ;;  %v596_v28 = vand.u32 2147483648, %v1389_v47 }
 0x1a2   :  { %v1411_v61 = vmax.f32 %v554_v60, 0.0  ;;  %v544_v18 = vmul.f32 2.0, %v389_v17 }
 0x1a3   :  { %1130 = vrsqrt.f32 %v1403_v16  ;;  %v561_v63 = vsub.f32 %v521_v41, %v541_v6  ;;  %vm670_vm10 = vcmp.eq.f32.partialorder %v1403_v16, inf  ;;  %vm672_vm11 = vcmp.eq.f32.partialorder %v1403_v16, 0.0 }
 0x1a4   :  { %v564_v21 = vsub.f32 %v524_v14, %v544_v18  ;;  %v365_v1 = vpop.xlane.xlu1 %364  ;;  %1132 = vrsqrt.f32 %v1411_v61  ;;  %v673_v33 = vand.u32 2147483648, %v1403_v16  ;;  %v617_v34 = vand.u32 2147483648, %v1411_v61 }
 0x1a5   :  { %v1427_v23 = vmax.f32 %v561_v63, 0.0  ;;  %v536_v5 = vmul.f32 2.0, %v365_v1  ;;  %v356_v24 = vpop.xlane.xlu0 %355  ;;  %vm614_vm14 = vcmp.eq.f32.partialorder %v1411_v61, inf  ;;  %vm616_vm1 = vcmp.eq.f32.partialorder %v1411_v61, 0.0 }
 0x1a6   :  { %v1432_v4 = vmax.f32 %v564_v21, 0.0  ;;  %v533_v15 = vmul.f32 2.0, %v356_v24 }
 0x1a7   :  { %1134 = vrsqrt.f32 %v1427_v23  ;;  %v556_v25 = vsub.f32 %v516_v57, %v536_v5  ;;  %v666_v44 = vand.u32 2147483648, %v1427_v23  ;;  %vm663_vm12 = vcmp.eq.f32.partialorder %v1427_v23, inf }
 0x1a8   :  { %v553_v26 = vsub.f32 %v1382_v42, %v533_v15  ;;  %v362_v27 = vpop.xlane.xlu1 %361  ;;  %1136 = vrsqrt.f32 %v1432_v4  ;;  %v687_v53 = vand.u32 2147483648, %v1432_v4  ;;  %vm665_vm13 = vcmp.eq.f32.partialorder %v1427_v23, 0.0 }
 0x1a9   :  { %v1127_v29 = vpop.eup %1126  ;;  %v1442_v30 = vmax.f32 %v556_v25, 0.0  ;;  %v535_v31 = vmul.f32 2.0, %v362_v27  ;;  %v386_v32 = vpop.xlane.xlu0 %385  ;;  %vm684_vm2 = vcmp.eq.f32.partialorder %v1432_v4, inf  ;;  %vm686_vm3 = vcmp.eq.f32.partialorder %v1432_v4, 0.0 }
 0x1aa   :  { %v1129_v36 = vpop.eup %1128  ;;  %v1447_v37 = vmax.f32 %v553_v26, 0.0  ;;  %v543_v39 = vmul.f32 2.0, %v386_v32  ;;  %v599_v41 = vmul.f32 %v1127_v29, %v1384_v49 }
 0x1ab   :  { %1138 = vrsqrt.f32 %v1442_v30  ;;  %v555_v42 = vsub.f32 %v1386_v38, %v535_v31  ;;  %v592_v43 = vmul.f32 %v1129_v36, %v1389_v47  ;;  %vm628_vm15 = vcmp.eq.f32.partialorder %v1442_v30, inf }
 0x1ac   :  { %1140 = vrsqrt.f32 %v1447_v37  ;;  %v563_v45 = vsub.f32 %v1396_v58, %v543_v39  ;;  %v368_v46 = vpop.xlane.xlu1 %367  ;;  %v601_v51 = vsel %vm600_vm4, %v1384_v49, %v599_v41  ;;  %v631_v6 = vand.u32 2147483648, %v1442_v30 }
 0x1ad   :  { %v1131_v10 = vpop.eup %1130  ;;  %v1461_v11 = vmax.f32 %v555_v42, 0.0  ;;  %v537_v38 = vmul.f32 2.0, %v368_v46  ;;  %v392_v54 = vpop.xlane.xlu0 %391  ;;  %v604_v55 = vsel %vm602_vm7, %v603_v12, %v601_v51  ;;  %v594_v56 = vsel %vm593_vm8, %v1389_v47, %v592_v43 }
 0x1ae   :  { %v1468_v57 = vmax.f32 %v563_v45, 0.0  ;;  %v545_v58 = vmul.f32 2.0, %v392_v54  ;;  %v732_v60 = vsub.f32 1.0, %v604_v55  ;;  %v669_v13 = vmul.f32 %v1131_v10, %v1403_v16  ;;  %v1133_v17 = vpop.eup %1132 }
 0x1af   :  { %1142 = vrsqrt.f32 %v1461_v11  ;;  %v557_v14 = vsub.f32 %v1400_v7, %v537_v38  ;;  %v597_v49 = vsel %vm595_vm9, %v596_v28, %v594_v56  ;;  %vm630_vm0 = vcmp.eq.f32.partialorder %v1442_v30, 0.0 }
 0x1b0   :  { %1144 = vrsqrt.f32 %v1468_v57  ;;  %v565_v18 = vsub.f32 %v1409_v62, %v545_v58  ;;  %v398_v63 = vpop.xlane.xlu1 %397  ;;  %v752_v21 = vmax.f32 %v732_v60, 0.0  ;;  %v671_v1 = vsel %vm670_vm10, %v1403_v16, %v669_v13 }
 0x1b1   :  { %v1135_v47 = vpop.eup %1134  ;;  %v1486_v7 = vmax.f32 %v557_v14, 0.0  ;;  %v547_v5 = vmul.f32 2.0, %v398_v63  ;;  %v401_v24 = vpop.xlane.xlu0 %400  ;;  %v674_v15 = vsel %vm672_vm11, %v673_v33, %v671_v1  ;;  %v731_v12 = vsub.f32 1.0, %v597_v49 }
 0x1b2   :  { %v1490_v62 = vmax.f32 %v565_v18, 0.0  ;;  %v548_v25 = vmul.f32 2.0, %v401_v24  ;;  %v772_v26 = vmul.f32 %v752_v21, %v752_v21  ;;  %v742_v27 = vsub.f32 1.0, %v674_v15  ;;  %v1137_v32 = vpop.eup %1136 }
 0x1b3   :  { %1146 = vrsqrt.f32 %v1486_v7  ;;  %v567_v28 = vsub.f32 %v1406_v8, %v547_v5  ;;  %v751_v29 = vmax.f32 %v731_v12, 0.0  ;;  %v662_v31 = vmul.f32 %v1135_v47, %v1427_v23 }
 0x1b4   :  { %1148 = vrsqrt.f32 %v1490_v62  ;;  %v568_v36 = vsub.f32 %v1417_v0, %v548_v25  ;;  %v377_v16 = vpop.xlane.xlu1 %376  ;;  %815 = vperm.xlu0 %1124, %v772_v26   ;;  %v762_v33 = vmax.f32 %v742_v27, 0.0  ;;  %v613_v39 = vmul.f32 %v1133_v17, %v1411_v61 }
 0x1b5   :  { %v1139_v41 = vpop.eup %1138  ;;  %v1499_v42 = vmax.f32 %v567_v28, 0.0  ;;  %v540_v43 = vmul.f32 2.0, %v377_v16  ;;  %v371_v8 = vpop.xlane.xlu0 %370  ;;  %v771_v45 = vmul.f32 %v751_v29, %v751_v29  ;;  %v664_v46 = vsel %vm663_vm12, %v1427_v23, %v662_v31 }
 0x1b6   :  { %v1141_v0 = vpop.eup %1140  ;;  %v1505_v51 = vmax.f32 %v568_v36, 0.0  ;;  %v538_v10 = vmul.f32 2.0, %v371_v8  ;;  %v782_v38 = vmul.f32 %v762_v33, %v762_v33  ;;  %v627_v54 = vmul.f32 %v1139_v41, %v1442_v30 }
 0x1b7   :  { %1150 = vrsqrt.f32 %v1499_v42  ;;  %v560_v55 = vsub.f32 %v1376_v35, %v540_v43  ;;  %v667_v56 = vsel %vm665_vm13, %v666_v44, %v664_v46  ;;  %v615_v58 = vsel %vm614_vm14, %v1411_v61, %v613_v39 }
 0x1b8   :  { %1152 = vrsqrt.f32 %v1505_v51  ;;  %v558_v60 = vsub.f32 %v1414_v19, %v538_v10  ;;  %v395_v13 = vpop.xlane.xlu1 %394  ;;  %845 = vperm.xlu1 %1125, %v782_v38   ;;  %v629_v14 = vsel %vm628_vm15, %v1442_v30, %v627_v54  ;;  %v741_v35 = vsub.f32 1.0, %v667_v56 }
 0x1b9   :  { %v1522_v49 = vpop.eup %1142  ;;  %v1524_v17 = vmax.f32 %v560_v55, 0.0  ;;  %v546_v23 = vmul.f32 2.0, %v395_v13  ;;  %v374_v44 = vpop.xlane.xlu0 %373  ;;  %v632_v18 = vsel %vm630_vm0, %v631_v6, %v629_v14  ;;  %v618_v19 = vsel %vm616_vm1, %v617_v34, %v615_v58 }
 0x1ba   :  { %v1145_v63 = vpop.eup %1144  ;;  %v1532_v21 = vmax.f32 %v558_v60, 0.0  ;;  %v539_v1 = vmul.f32 2.0, %v374_v44  ;;  %v736_v47 = vsub.f32 1.0, %v632_v18  ;;  %v761_v5 = vmax.f32 %v741_v35, 0.0 }
 0x1bb   :  { %1154 = vrsqrt.f32 %v1524_v17  ;;  %v566_v24 = vsub.f32 %v1420_v20, %v546_v23  ;;  %v734_v15 = vsub.f32 1.0, %v618_v19  ;;  %v683_v12 = vmul.f32 %v1137_v32, %v1432_v4 }
 0x1bc   :  { %1156 = vrsqrt.f32 %v1532_v21  ;;  %v559_v30 = vsub.f32 %v1380_v40, %v539_v1  ;;  %v139_v6 = vpop.xlane.xlu1 %138  ;;  %812 = vperm.xlu1 %1125, %v771_v45   ;;  %v756_v61 = vmax.f32 %v736_v47, 0.0  ;;  %v781_v34 = vmul.f32 %v761_v5, %v761_v5 }
 0x1bd   :  { %v1147_v25 = vpop.eup %1146  ;;  %v1539_v26 = vmax.f32 %v566_v24, 0.0  ;;  %v530_v27 = vadd.f32 %v490_v22, %v139_v6  ;;  %v404_v28 = vpop.xlane.xlu0 %403  ;;  %v754_v20 = vmax.f32 %v734_v15, 0.0  ;;  %v685_v29 = vsel %vm684_vm2, %v1432_v4, %v683_v12 }
 0x1be   :  { %v1547_v31 = vpop.eup %1148  ;;  %v1549_v40 = vmax.f32 %v559_v30, 0.0  ;;  %v549_v32 = vmul.f32 2.0, %v404_v28  ;;  %v776_v36 = vmul.f32 %v756_v61, %v756_v61  ;;  %v688_v16 = vsel %vm686_vm3, %v687_v53, %v685_v29 }
 0x1bf   :  { %1158 = vrsqrt.f32 %v1539_v26  ;;  %v774_v9 = vmul.f32 %v754_v20, %v754_v20  ;;  %v744_v22 = vsub.f32 1.0, %v688_v16  ;;  %v606_v33 = vmul.f32 %v1141_v0, %v1447_v37 }
 0x1c0   :  { %1160 = vrsqrt.f32 %v1549_v40  ;;  %v569_v39 = vsub.f32 %v1423_v2, %v549_v32  ;;  %827 = vperm.xlu0 %1124, %v776_v36   ;;  %842 = vperm.xlu1 %1125, %v781_v34   ;;  %vm607_vm5 = vcmp.eq.f32.partialorder %v1447_v37, inf  ;;  %vm609_vm6 = vcmp.eq.f32.partialorder %v1447_v37, 0.0 }
 0x1c1   :  { %v1151_v41 = vpop.eup %1150  ;;  %v407_v43 = vpop.xlane.xlu0 %406  ;;  %v764_v4 = vmax.f32 %v744_v22, 0.0  ;;  %v608_v53 = vsel %vm607_vm5, %v1447_v37, %v606_v33  ;;  %v610_v8 = vand.u32 2147483648, %v1447_v37  ;;  %v676_v45 = vmul.f32 %v1145_v63, %v1468_v57 }
 0x1c2   :  { %v1564_v46 = vpop.eup %1152  ;;  %v1566_v0 = vmax.f32 %v569_v39, 0.0  ;;  %v550_v2 = vmul.f32 2.0, %v407_v43  ;;  %vm677_vm4 = vcmp.eq.f32.partialorder %v1468_v57, inf  ;;  %vm679_vm7 = vcmp.eq.f32.partialorder %v1468_v57, 0.0 }
 0x1c3   :  { %v784_v10 = vmul.f32 %v764_v4, %v764_v4  ;;  %v611_v38 = vsel %vm609_vm6, %v610_v8, %v608_v53  ;;  %v678_v54 = vsel %vm677_vm4, %v1468_v57, %v676_v45  ;;  %v680_v55 = vand.u32 2147483648, %v1468_v57 }
 0x1c4   :  { %1162 = vrsqrt.f32 %v1566_v0  ;;  %v570_v37 = vsub.f32 %v530_v27, %v550_v2  ;;  %821 = vperm.xlu1 %1125, %v774_v9   ;;  %v733_v56 = vsub.f32 1.0, %v611_v38  ;;  %vm642_vm8 = vcmp.eq.f32.partialorder %v1532_v21, inf }
 0x1c5   :  { %v1574_v58 = vpop.eup %1154  ;;  %v681_v60 = vsel %vm679_vm7, %v680_v55, %v678_v54  ;;  %vm644_vm9 = vcmp.eq.f32.partialorder %v1532_v21, 0.0  ;;  %v645_v13 = vand.u32 2147483648, %v1532_v21  ;;  %v620_v14 = vmul.f32 %v1522_v49, %v1461_v11 }
 0x1c6   :  { %v1157_v35 = vpop.eup %1156  ;;  %v1580_v23 = vmax.f32 %v570_v37, 0.0  ;;  %v753_v57 = vmax.f32 %v733_v56, 0.0  ;;  %v743_v44 = vsub.f32 1.0, %v681_v60  ;;  %vm621_vm10 = vcmp.eq.f32.partialorder %v1461_v11, inf }
 0x1c7   :  { %v641_v18 = vmul.f32 %v1157_v35, %v1532_v21  ;;  %v622_v19 = vsel %vm621_vm10, %v1461_v11, %v620_v14  ;;  %vm623_vm11 = vcmp.eq.f32.partialorder %v1461_v11, 0.0  ;;  %v624_v63 = vand.u32 2147483648, %v1461_v11 }
 0x1c8   :  { %1164 = vrsqrt.f32 %v1580_v23  ;;  %851 = vperm.xlu1 %1125, %v784_v10   ;;  %v773_v1 = vmul.f32 %v753_v57, %v753_v57  ;;  %v763_v49 = vmax.f32 %v743_v44, 0.0  ;;  %v634_v47 = vmul.f32 %v1147_v25, %v1486_v7 }
 0x1c9   :  { %v1589_v5 = vpop.eup %1158  ;;  %v643_v24 = vsel %vm642_vm8, %v1532_v21, %v641_v18  ;;  %v625_v15 = vsel %vm623_vm11, %v624_v63, %v622_v19  ;;  %vm635_vm12 = vcmp.eq.f32.partialorder %v1486_v7, inf  ;;  %vm637_vm13 = vcmp.eq.f32.partialorder %v1486_v7, 0.0 }
 0x1ca   :  { %v1161_v12 = vpop.eup %1160  ;;  %v783_v11 = vmul.f32 %v763_v49, %v763_v49  ;;  %v646_v30 = vsel %vm644_vm9, %v645_v13, %v643_v24  ;;  %v735_v6 = vsub.f32 1.0, %v625_v15  ;;  %v636_v61 = vsel %vm635_vm12, %v1486_v7, %v634_v47 }
 0x1cb   :  { %v738_v34 = vsub.f32 1.0, %v646_v30  ;;  %v638_v25 = vand.u32 2147483648, %v1486_v7  ;;  %v690_v27 = vmul.f32 %v1547_v31, %v1490_v62  ;;  %vm691_vm14 = vcmp.eq.f32.partialorder %v1490_v62, inf }
 0x1cc   :  { %818 = vperm.xlu1 %1125, %v773_v1   ;;  %v755_v28 = vmax.f32 %v735_v6, 0.0  ;;  %vm693_vm15 = vcmp.eq.f32.partialorder %v1490_v62, 0.0  ;;  %v694_v20 = vand.u32 2147483648, %v1490_v62  ;;  %v704_v21 = vmul.f32 %v1151_v41, %v1499_v42 }
 0x1cd   :  { %v758_v29 = vmax.f32 %v738_v34, 0.0  ;;  %v639_v32 = vsel %vm637_vm13, %v638_v25, %v636_v61  ;;  %v692_v36 = vsel %vm691_vm14, %v1490_v62, %v690_v27  ;;  %vm705_vm0 = vcmp.eq.f32.partialorder %v1499_v42, inf }
 0x1ce   :  { %v1163_v16 = vpop.eup %1162  ;;  %v775_v31 = vmul.f32 %v755_v28, %v755_v28  ;;  %v737_v9 = vsub.f32 1.0, %v639_v32  ;;  %v695_v22 = vsel %vm693_vm15, %v694_v20, %v692_v36  ;;  %v706_v33 = vsel %vm705_vm0, %v1499_v42, %v704_v21 }
 0x1cf   :  { %v778_v39 = vmul.f32 %v758_v29, %v758_v29  ;;  %v745_v43 = vsub.f32 1.0, %v695_v22  ;;  %vm707_vm1 = vcmp.eq.f32.partialorder %v1499_v42, 0.0  ;;  %v708_v41 = vand.u32 2147483648, %v1499_v42 }
 0x1d0   :  { %848 = vperm.xlu1 %1125, %v783_v11   ;;  %v757_v4 = vmax.f32 %v737_v9, 0.0  ;;  %v711_v7 = vmul.f32 %v1564_v46, %v1505_v51  ;;  %vm712_vm2 = vcmp.eq.f32.partialorder %v1505_v51, inf  ;;  %vm714_vm3 = vcmp.eq.f32.partialorder %v1505_v51, 0.0 }
 0x1d1   :  { %833 = vperm.xlu0 %1124, %v778_v39   ;;  %v765_v62 = vmax.f32 %v745_v43, 0.0  ;;  %v709_v53 = vsel %vm707_vm1, %v708_v41, %v706_v33  ;;  %v715_v8 = vand.u32 2147483648, %v1505_v51  ;;  %v718_v45 = vmul.f32 %v1163_v16, %v1566_v0 }
 0x1d2   :  { %v1165_v2 = vpop.eup %1164  ;;  %v777_v10 = vmul.f32 %v757_v4, %v757_v4  ;;  %v747_v38 = vsub.f32 1.0, %v709_v53  ;;  %v713_v42 = vsel %vm712_vm2, %v1505_v51, %v711_v7  ;;  %vm719_vm5 = vcmp.eq.f32.partialorder %v1566_v0, inf }
 0x1d3   :  { %v785_v54 = vmul.f32 %v765_v62, %v765_v62  ;;  %v716_v46 = vsel %vm714_vm3, %v715_v8, %v713_v42  ;;  %v720_v55 = vsel %vm719_vm5, %v1566_v0, %v718_v45  ;;  %vm721_vm6 = vcmp.eq.f32.partialorder %v1566_v0, 0.0 }
 0x1d4   :  { %824 = vperm.xlu1 %1125, %v775_v31   ;;  %v767_v37 = vmax.f32 %v747_v38, 0.0  ;;  %v748_v56 = vsub.f32 1.0, %v716_v46  ;;  %v722_v60 = vand.u32 2147483648, %v1566_v0  ;;  %v655_v13 = vmul.f32 %v1574_v58, %v1524_v17 }
 0x1d5   :  { %830 = vperm.xlu0 %1124, %v777_v10   ;;  %vm656_vm4 = vcmp.eq.f32.partialorder %v1524_v17, inf  ;;  %vm658_vm7 = vcmp.eq.f32.partialorder %v1524_v17, 0.0  ;;  %v659_v51 = vand.u32 2147483648, %v1524_v17  ;;  %v648_v14 = vmul.f32 %v1161_v12, %v1549_v40 }
 0x1d6   :  { %v787_v35 = vmul.f32 %v767_v37, %v767_v37  ;;  %v768_v57 = vmax.f32 %v748_v56, 0.0  ;;  %v723_v44 = vsel %vm721_vm6, %v722_v60, %v720_v55  ;;  %v657_v18 = vsel %vm656_vm4, %v1524_v17, %v655_v13 }
 0x1d7   :  { %v749_v19 = vsub.f32 1.0, %v723_v44  ;;  %v660_v63 = vsel %vm658_vm7, %v659_v51, %v657_v18  ;;  %vm649_vm8 = vcmp.eq.f32.partialorder %v1549_v40, inf  ;;  %vm651_vm9 = vcmp.eq.f32.partialorder %v1549_v40, 0.0 }
 0x1d8   :  { %854 = vperm.xlu1 %1125, %v785_v54   ;;  %v788_v0 = vmul.f32 %v768_v57, %v768_v57  ;;  %v740_v58 = vsub.f32 1.0, %v660_v63  ;;  %v650_v1 = vsel %vm649_vm8, %v1549_v40, %v648_v14  ;;  %v652_v49 = vand.u32 2147483648, %v1549_v40 }
 0x1d9   :  { %860 = vperm.xlu0 %1124, %v787_v35   ;;  %v769_v47 = vmax.f32 %v749_v19, 0.0  ;;  %v697_v24 = vmul.f32 %v1589_v5, %v1539_v26  ;;  %vm698_vm10 = vcmp.eq.f32.partialorder %v1539_v26, inf  ;;  %vm700_vm11 = vcmp.eq.f32.partialorder %v1539_v26, 0.0 }
 0x1da   :  { %v760_v17 = vmax.f32 %v740_v58, 0.0  ;;  %v653_v15 = vsel %vm651_vm9, %v652_v49, %v650_v1  ;;  %v701_v12 = vand.u32 2147483648, %v1539_v26  ;;  %v725_v11 = vmul.f32 %v1165_v2, %v1580_v23 }
 0x1db   :  { %v789_v30 = vmul.f32 %v769_v47, %v769_v47  ;;  %v739_v6 = vsub.f32 1.0, %v653_v15  ;;  %v699_v61 = vsel %vm698_vm10, %v1539_v26, %v697_v24  ;;  %vm726_vm12 = vcmp.eq.f32.partialorder %v1580_v23, inf }
 0x1dc   :  { %863 = vperm.xlu1 %1125, %v788_v0   ;;  %v702_v40 = vsel %vm700_vm11, %v701_v12, %v699_v61  ;;  %v727_v5 = vsel %vm726_vm12, %v1580_v23, %v725_v11  ;;  %v729_v34 = vand.u32 2147483648, %v1580_v23  ;;  %v780_v25 = vmul.f32 %v760_v17, %v760_v17 }
 0x1dd   :  { %866 = vperm.xlu0 %1124, %v789_v30   ;;  %v759_v27 = vmax.f32 %v739_v6, 0.0  ;;  %v746_v28 = vsub.f32 1.0, %v702_v40  ;;  %vm728_vm13 = vcmp.eq.f32.partialorder %v1580_v23, 0.0  ;;  %v1648_v23 = vsub.s32 %v1275_v48, %v1334_v3 }
 0x1de   :  { %v730_v20 = vsel %vm728_vm13, %v729_v34, %v727_v5  ;;  %vm951_vm14 = vcmask 1041409   ;;  %vm953_vm15 = vcmask 1042434   ;;  %vm955_vm0 = vcmask 1043459  }
 0x1df   :  { %v779_v21 = vmul.f32 %v759_v27, %v759_v27  ;;  %v766_v29 = vmax.f32 %v746_v28, 0.0  ;;  %v750_v32 = vsub.f32 1.0, %v730_v20  ;;  %vm957_vm1 = vcmask 1044484  }
 0x1e0   :  { %839 = vperm.xlu1 %1125, %v780_v25   ;;  %vm959_vm2 = vcmask 1045509   ;;  %vm961_vm3 = vcmask 1046534   ;;  %vm963_vm5 = vcmask 1047559   ;;  %vm978_vm6 = vcmask 64512  }
 0x1e1   :  { %v786_v26 = vmul.f32 %v766_v29, %v766_v29  ;;  %v770_v36 = vmax.f32 %v750_v32, 0.0  ;;  %vm985_vm4 = vcmask 60416   ;;  %vm1007_vm7 = vcmask 7168  }
 0x1e2   :  { %vm1011_vm9 = vcmask 3072  }
 0x1e3   :  { %v790_v16 = vmul.f32 %v770_v36, %v770_v36 }
 0x1e4   :  { %836 = vperm.xlu1 %1125, %v779_v21  }
 0x1e8   :  { %857 = vperm.xlu1 %1125, %v786_v26  }
 0x1ec   :  { %869 = vperm.xlu1 %1125, %v790_v16  }
 0x233   :  { %v816_v43 = vpop.permute.xlu0 %815 }
 0x234   :  { %v878_v53 = vrot.slane %v816_v43, %v1648_v23 }
 0x237   :  { %v846_v31 = vpop.permute.xlu1 %845 }
 0x238   :  { %v918_v49 = vrot.slane %v846_v31, %v1648_v23 }
 0x23b   :  { %v813_v9 = vpop.permute.xlu1 %812 }
 0x23c   :  { %v874_v7 = vrot.slane %v813_v9, %v1648_v23 }
 0x23e   :  { %v952_v2 = vsel %vm951_vm14, %v878_v53, %v874_v7 }
 0x23f   :  { %v843_v22 = vpop.permute.xlu1 %842  ;;  %v828_v4 = vpop.permute.xlu0 %827 }
 0x240   :  { %v894_v46 = vrot.slane %v828_v4, %v1648_v23  ;;  %v914_v1 = vrot.slane %v843_v22, %v1648_v23  ;;  %v993_v22 = vadd.s32 16, %v1334_v3 }
 0x242   :  { %vm1000_vm8 = vcmp.lt.s32.totalorder %v993_v22, 20 }
 0x243   :  { %v822_v33 = vpop.permute.xlu1 %821 }
 0x244   :  { %v886_v48 = vrot.slane %v822_v33, %v1648_v23 }
 0x247   :  { %v852_v39 = vpop.permute.xlu1 %851 }
 0x248   :  { %v926_v30 = vrot.slane %v852_v39, %v1648_v23 }
 0x24b   :  { %v819_v41 = vpop.permute.xlu1 %818 }
 0x24c   :  { %v882_v62 = vrot.slane %v819_v41, %v1648_v23 }
 0x24e   :  { %v954_v10 = vsel %vm953_vm15, %v882_v62, %v952_v2 }
 0x24f   :  { %v849_v8 = vpop.permute.xlu1 %848  ;;  %v956_v55 = vsel %vm955_vm0, %v886_v48, %v954_v10 }
 0x250   :  { %v834_v45 = vpop.permute.xlu0 %833  ;;  %v922_v15 = vrot.slane %v849_v8, %v1648_v23 }
 0x251   :  { %v902_v60 = vrot.slane %v834_v45, %v1648_v23 }
 0x253   :  { %v825_v38 = vpop.permute.xlu1 %824 }
 0x254   :  { %v890_v42 = vrot.slane %v825_v38, %v1648_v23  ;;  %v831_v54 = vpop.permute.xlu0 %830 }
 0x255   :  { %v898_v37 = vrot.slane %v831_v54, %v1648_v23 }
 0x256   :  { %v958_v56 = vsel %vm957_vm1, %v890_v42, %v956_v55 }
 0x257   :  { %v855_v13 = vpop.permute.xlu1 %854  ;;  %v960_v51 = vsel %vm959_vm2, %v894_v46, %v958_v56 }
 0x258   :  { %v962_v14 = vsel %vm961_vm3, %v898_v37, %v960_v51  ;;  %v861_v19 = vpop.permute.xlu0 %860  ;;  %v930_v40 = vrot.slane %v855_v13, %v1648_v23 }
 0x259   :  { %v964_v35 = vsel %vm963_vm5, %v902_v60, %v962_v14  ;;  %v938_v6 = vrot.slane %v861_v19, %v1648_v23 }
 0x25a   :  { %v979_v57 = vsel %vm978_vm6, %v964_v35, -inf }
 0x25b   :  { %v864_v44 = vpop.permute.xlu1 %863  ;;  %980 = vmax.xlane.f32.xlu0 %v979_v57 }
 0x25c   :  { %v942_v47 = vrot.slane %v864_v44, %v1648_v23  ;;  %v867_v24 = vpop.permute.xlu0 %866 }
 0x25d   :  { %v946_v5 = vrot.slane %v867_v24, %v1648_v23 }
 0x25e   :  { %v972_v25 = vsel %vm951_vm14, %v942_v47, %v938_v6 }
 0x25f   :  { %v840_v18 = vpop.permute.xlu1 %839  ;;  %v973_v36 = vsel %vm953_vm15, %v946_v5, %v972_v25 }
 0x260   :  { %v910_v0 = vrot.slane %v840_v18, %v1648_v23 }
 0x263   :  { %v837_v63 = vpop.permute.xlu1 %836 }
 0x264   :  { %v906_v58 = vrot.slane %v837_v63, %v1648_v23 }
 0x266   :  { %v965_v17 = vsel %vm951_vm14, %v910_v0, %v906_v58 }
 0x267   :  { %v966_v12 = vsel %vm953_vm15, %v914_v1, %v965_v17  ;;  %v858_v11 = vpop.permute.xlu1 %857 }
 0x268   :  { %v967_v61 = vsel %vm955_vm0, %v918_v49, %v966_v12  ;;  %v934_v27 = vrot.slane %v858_v11, %v1648_v23 }
 0x269   :  { %v968_v34 = vsel %vm957_vm1, %v922_v15, %v967_v61 }
 0x26a   :  { %v969_v28 = vsel %vm959_vm2, %v926_v30, %v968_v34 }
 0x26b   :  { %v870_v20 = vpop.permute.xlu1 %869  ;;  %v970_v21 = vsel %vm961_vm3, %v930_v40, %v969_v28 }
 0x26c   :  { %v950_v29 = vrot.slane %v870_v20, %v1648_v23  ;;  %v971_v32 = vsel %vm963_vm5, %v934_v27, %v970_v21 }
 0x26d   :  { %v982_v26 = vsel %vm978_vm6, %v971_v32, -inf }
 0x26e   :  { %983 = vmax.xlane.f32.xlu1 %v982_v26  ;;  %v974_v16 = vsel %vm955_vm0, %v950_v29, %v973_v36 }
 0x26f   :  { %v986_v31 = vsel %vm985_vm4, %v974_v16, -inf }
 0x270   :  { %987 = vmax.xlane.f32.xlu0 %v986_v31 }
 0x2e8   :  { %v981_v9 = vpop.xlane.xlu0 %980 }
 0x2e9   :  { %v1001_v33 = vadd.f32 %v981_v9, %v1319_v50 }
 0x2eb   :  { %v1008_v41 = vsel %vm1007_vm7, %v1001_v33, 0.0 }
 0x2fb   :  { %v984_v39 = vpop.xlane.xlu1 %983 }
 0x2fc   :  { %v1002_v43 = vadd.f32 %v984_v39, %v1321_v52 }
 0x2fd   :  { %v988_v23 = vpop.xlane.xlu0 %987 }
 0x2fe   :  { %v1009_v4 = vsel %vm1007_vm7, %v1002_v43, 0.0  ;;  %v1003_v7 = vadd.f32 %v988_v23, %v1323_v59 }
 0x2ff   :  { %v1010_v62 = vadd.f32 %v1009_v4, %v1008_v41 }
 0x300   :  { %v1006_v53 = vsel %vm1000_vm8, %v1003_v7, 0.0 }
 0x301   :  { %v1012_v8 = vsel %vm1011_vm9, %v1006_v53, 0.0 }
 0x302   :  { %v1013_v45 = vadd.f32 %v1012_v8, %v1010_v62 }
 0x304   :  { %1014 = vadd.xlane.f32.xlu0 %v1013_v45 }
 0x391   :  { %v1015_v2 = vpop.xlane.xlu0 %1014 }
 0x392   :  { %v1016_v3 = vrot.slane %v1015_v2, 4 }
 0x394   :  { %v1017_v10 = vadd.f32 %v1016_v3, %v1015_v2 }
 0x396   :  { %v1018_v50 = vrot.slane %v1017_v10, 2 }
 0x398   :  { %v1019_v48 = vadd.f32 %v1018_v50, %v1017_v10 }
 0x39a   :  { %v1020_v38 = vrot.slane %v1019_v48, 1 }
 0x39c   :  { %v1021_v42 = vadd.f32 %v1020_v38, %v1019_v48 }
 0x39e   :  { %1115 = vpush %v1021_v42 }
 0x3cf   :  { %s1116_s1 = spop %1115 }
 0x3d0   :  { %s1031_s6 = smul.f32 0.05, %s1116_s1 }
 0x3d2   :  { %1032 = sst [smem:[#allocation7]] %s1031_s6 }
 0x3d3   :  { %1219 = shalt.err (!%p1216_p4)
}
 0x3d4   :  { %s1231_s14 = smov [#allocation7]  }
 0x3d5   :  { %1040 = dma.smem_to_hbm %s1231_s14, 16, %s1707_s2, [#allocation4]  }
 0x3d6   :  { %1224 = dma.done.wait [#allocation4], 16  }
 0x3d7   :  { %1225 = vsyncadd [#allocation4], 4294967280 }
 0x3d8   :  { %1044 = sfence }
 0x3d9   :  { %1045 = vsyncpa [#allocation3], 1 }
 0x3da   :  { %1046 = vsyncpa [#allocation6], 1 }
 0x3db   :  { %1047 = vsyncpa [#allocation4], 1 }

</bundles_post_ra>
